<compile_context>
chip_gen: v5e
topology: v5e:2x2
jax: 0.10.0
libtpu: 0.0.40
codegen_flags: <defaults>
</compile_context>

<pallas_src>
import functools

import jax
import jax.numpy as jnp
from jax.experimental import pallas as pl
from jax.experimental.pallas import tpu as pltpu

ADV_TEMP = 1.0
REGULARIZATION = 1e-5

# Tables smaller than this go through plain XLA (launch overhead dominates).
# Kept small so the demo entity table still exercises the Pallas path.
_NORM3_XLA_MAX = 2048


def _vmem_config():
    """(target block bytes, vmem_limit_bytes) chosen per TPU generation."""
    cap = None
    try:
        info = pltpu.get_tpu_info()
        cap = getattr(info, "vmem_capacity_bytes", None)
    except Exception:
        cap = None
    if cap is None:
        cap = 64 * 1024 * 1024  # conservative: assume v7x-sized VMEM
    if cap >= 128 * 1024 * 1024:          # v5e / v6e: 128 MiB physical VMEM
        return 8 * 1024 * 1024, 64 * 1024 * 1024
    return 4 * 1024 * 1024, 32 * 1024 * 1024   # v7x: 64 MiB physical


_TARGET_BLOCK_BYTES, _VMEM_LIMIT = _vmem_config()


def _round_up(a, b):
    return (a + b - 1) // b * b


def _sublane(dtype):
    # dtype-native sublane packing: f32 -> 8, bf16 -> 16, int8/fp8 -> 32
    return max(8, 32 // jnp.dtype(dtype).itemsize)


def _logsigmoid(x):
    # numerically stable: logsigmoid(x) = min(x, 0) - log1p(exp(-|x|))
    return jnp.minimum(x, 0.0) - jnp.log1p(jnp.exp(-jnp.abs(x)))


# ---------------------------------------------------------------------------
# Kernel 1: main adversarial loss.
#   Grid (nsplit, blocks_per_split): leading axis "parallel" (megacore), trailing
#   axis is the batch-block reduction. pos / w are VMEM-resident (zero padded on
#   host), sliced with pl.ds per block. The softmax normalization is fused into
#   the row reduction, and for adv_temp==1 the softmax exponent is reused for
#   logsigmoid(-x) (2 EUP ops per element instead of 3). Vector (8,1) accumulators;
#   raw partial sums are emitted per split and combined on host.
# ---------------------------------------------------------------------------
def adv_loss_kernel(pos_ref, neg_ref, w_ref, ow_ref, op_ref, on_ref,
                    aw_ref, ap_ref, an_ref, *, B, TB, bps, adv_temp, need_mask):
    c = pl.program_id(0)
    i = pl.program_id(1)

    @pl.when(i == 0)
    def _():
        aw_ref[...] = jnp.zeros_like(aw_ref)
        ap_ref[...] = jnp.zeros_like(ap_ref)
        an_ref[...] = jnp.zeros_like(an_ref)

    ublk = c * bps + i                    # unclamped global block index
    row0 = ublk * TB                      # always in-bounds for the padded pos / w

    pos = pos_ref[pl.ds(row0, TB), :].astype(jnp.float32)   # (TB, 1)
    w = w_ref[pl.ds(row0, TB), :].astype(jnp.float32)       # (TB, 1), 0 on padding
    neg = neg_ref[...].astype(jnp.float32)                   # (TB, N)

    # self-adversarial softmax, normalization fused into the reduction
    logits = neg if adv_temp == 1.0 else neg * adv_temp
    m = jnp.max(logits, axis=1, keepdims=True)                # (TB, 1)
    mc = jnp.maximum(m, -30.0)                                # overflow-safe shift
    e = jnp.exp(logits - mc)                                  # (TB, N)
    s_den = jnp.sum(e, axis=1, keepdims=True)                 # (TB, 1)

    if adv_temp == 1.0:
        # logsigmoid(-x) = -(mc + log(exp(-mc) + exp(x - mc))); reuses e -> 2 EUP/elt
        ls_neg = -(mc + jnp.log(jnp.exp(-mc) + e))            # (TB, N)
    else:
        ls_neg = _logsigmoid(-neg)                            # (TB, N)

    s_num = jnp.sum(e * ls_neg, axis=1, keepdims=True)        # (TB, 1)
    neg_red = s_num / s_den                                   # (TB, 1)

    if need_mask:
        # rows past B (ragged last block / duplicated clamped block) may hold garbage
        rows = jax.lax.broadcasted_iota(jnp.int32, (TB, 1), 0) + row0
        neg_red = jnp.where(rows < B, neg_red, 0.0)

    pos_ls = _logsigmoid(pos)                                 # (TB, 1)

    # pure VPU accumulation into (8,1) vectors; cross-sublane reduce only at finalize
    aw_ref[...] = aw_ref[...] + jnp.sum(w.reshape(TB // 8, 8, 1), axis=0)
    ap_ref[...] = ap_ref[...] + jnp.sum((w * pos_ls).reshape(TB // 8, 8, 1), axis=0)
    an_ref[...] = an_ref[...] + jnp.sum((w * neg_red).reshape(TB // 8, 8, 1), axis=0)

    @pl.when(i == pl.num_programs(1) - 1)
    def _():
        ow_ref[...] = jnp.full((1, 1, 1), jnp.sum(aw_ref[...]), dtype=jnp.float32)
        op_ref[...] = jnp.full((1, 1, 1), jnp.sum(ap_ref[...]), dtype=jnp.float32)
        on_ref[...] = jnp.full((1, 1, 1), jnp.sum(an_ref[...]), dtype=jnp.float32)


def adv_loss_main(pos_score, neg_score, subsampling_weight, adv_temp=ADV_TEMP):
    B, N = neg_score.shape
    sub = _sublane(neg_score.dtype)
    n_pad = _round_up(N, 128)
    itemsize = neg_score.dtype.itemsize

    tb = (_TARGET_BLOCK_BYTES // (n_pad * itemsize)) // sub * sub
    tb = max(sub, tb)
    tb = min(tb, _round_up(B, sub))

    nblocks = pl.cdiv(B, tb)
    nsplit = 2 if nblocks >= 2 else 1            # megacore split (v7x), neutral elsewhere
    bps = pl.cdiv(nblocks, nsplit)
    need_mask = (B % tb != 0) or (nsplit * bps != nblocks)

    # pos / w padded once (zeros -> padded rows contribute nothing) and kept resident.
    b_pad = nsplit * bps * tb
    pos2 = pos_score.reshape(B, 1)
    w2 = subsampling_weight.reshape(B, 1)
    if b_pad != B:
        pos2 = jnp.pad(pos2, ((0, b_pad - B), (0, 0)))
        w2 = jnp.pad(w2, ((0, b_pad - B), (0, 0)))

    if nsplit * bps == nblocks:
        neg_idx = lambda c, i: (c * bps + i, 0)
    else:
        neg_idx = lambda c, i: (jnp.minimum(c * bps + i, nblocks - 1), 0)

    kernel = functools.partial(adv_loss_kernel, B=B, TB=tb, bps=bps,
                               adv_temp=adv_temp, need_mask=need_mask)
    ow, op, on = pl.pallas_call(
        kernel,
        out_shape=(
            jax.ShapeDtypeStruct((nsplit, 1, 1), jnp.float32),
            jax.ShapeDtypeStruct((nsplit, 1, 1), jnp.float32),
            jax.ShapeDtypeStruct((nsplit, 1, 1), jnp.float32),
        ),
        grid_spec=pltpu.PrefetchScalarGridSpec(
            num_scalar_prefetch=0,
            grid=(nsplit, bps),
            in_specs=[
                pl.BlockSpec((b_pad, 1), lambda c, i: (0, 0)),   # pos: resident
                pl.BlockSpec((tb, N), neg_idx),                   # neg: pipelined
                pl.BlockSpec((b_pad, 1), lambda c, i: (0, 0)),   # w:   resident
            ],
            out_specs=[
                pl.BlockSpec((1, 1, 1), lambda c, i: (c, 0, 0)),
                pl.BlockSpec((1, 1, 1), lambda c, i: (c, 0, 0)),
                pl.BlockSpec((1, 1, 1), lambda c, i: (c, 0, 0)),
            ],
            scratch_shapes=[
                pltpu.VMEM((8, 1), jnp.float32),
                pltpu.VMEM((8, 1), jnp.float32),
                pltpu.VMEM((8, 1), jnp.float32),
            ],
        ),
        compiler_params=pltpu.CompilerParams(
            dimension_semantics=("parallel", "arbitrary"),
            vmem_limit_bytes=_VMEM_LIMIT,
        ),
    )(pos2, neg_score, w2)

    # Combine RAW sums across splits before dividing (per-split losses would be wrong).
    wsum = jnp.sum(ow)
    wpos = jnp.sum(op)
    wneg = jnp.sum(on)
    return -0.5 * (wpos + wneg) / wsum


# ---------------------------------------------------------------------------
# Kernel 2: ||W||_3 ** 3 == sum(|W|^3), lane-dense flat view.
#   The table is viewed as (total//128, 128); grid = (nsplit, blocks_per_split)
#   with a "parallel" leading axis. (8,128) VMEM accumulator updated with pure VPU
#   adds; single cross-lane reduce in the per-split finalize. Ragged / duplicated
#   (clamped) blocks handled by a global-row mask.
# ---------------------------------------------------------------------------
def norm3_kernel(x_ref, out_ref, acc_ref, *, R, rb, bps, need_mask):
    c = pl.program_id(0)
    i = pl.program_id(1)

    @pl.when(i == 0)
    def _():
        acc_ref[...] = jnp.zeros_like(acc_ref)

    x = x_ref[...].astype(jnp.float32)                       # (rb, 128)
    if need_mask:
        row0 = (c * bps + i) * rb
        rows = jax.lax.broadcasted_iota(jnp.int32, (rb, 1), 0) + row0
        x = jnp.where(rows < R, x, 0.0)

    cube = jnp.abs(x) * x * x                                 # |x|^3, pure VPU multiplies
    acc_ref[...] = acc_ref[...] + jnp.sum(cube.reshape(rb // 8, 8, 128), axis=0)

    @pl.when(i == pl.num_programs(1) - 1)
    def _():
        out_ref[...] = jnp.full((1, 1, 1), jnp.sum(acc_ref[...]), dtype=jnp.float32)


def norm3_cubed(x):
    total = x.size
    if total < _NORM3_XLA_MAX:
        # Tiny table (e.g. relation embeddings): a dedicated pallas_call would be
        # dominated by launch + pipeline-warmup overhead; plain XLA is cheaper.
        return jnp.sum(jnp.abs(x.astype(jnp.float32)) ** 3)

    flat = x.reshape(-1)                     # free: row-major view
    n_main = (total // 128) * 128
    r2 = n_main // 128
    x2 = flat[:n_main].reshape(r2, 128)      # lane-dense 2D view

    sub = _sublane(x.dtype)
    itemsize = x.dtype.itemsize
    rb = (_TARGET_BLOCK_BYTES // (128 * itemsize)) // sub * sub
    rb = max(sub, min(rb, _round_up(r2, sub)))

    nblocks = pl.cdiv(r2, rb)
    nsplit = 2 if nblocks >= 2 else 1        # use both TensorCores whenever possible
    bps = pl.cdiv(nblocks, nsplit)
    need_mask = (r2 % rb != 0) or (nsplit * bps != nblocks)

    if nsplit * bps == nblocks:
        idx_map = lambda c, i: (c * bps + i, 0)
    else:
        idx_map = lambda c, i: (jnp.minimum(c * bps + i, nblocks - 1), 0)

    kernel = functools.partial(norm3_kernel, R=r2, rb=rb, bps=bps, need_mask=need_mask)
    out = pl.pallas_call(
        kernel,
        out_shape=jax.ShapeDtypeStruct((nsplit, 1, 1), jnp.float32),
        grid_spec=pltpu.PrefetchScalarGridSpec(
            num_scalar_prefetch=0,
            grid=(nsplit, bps),
            in_specs=[pl.BlockSpec((rb, 128), idx_map)],
            out_specs=pl.BlockSpec((1, 1, 1), lambda c, i: (c, 0, 0)),
            scratch_shapes=[pltpu.VMEM((8, 128), jnp.float32)],
        ),
        compiler_params=pltpu.CompilerParams(
            dimension_semantics=("parallel", "arbitrary"),
            vmem_limit_bytes=_VMEM_LIMIT,
        ),
    )(x2)
    result = jnp.sum(out)

    if n_main != total:
        # <128-element tail of the flat view: negligible, compute in plain XLA.
        result = result + jnp.sum(jnp.abs(flat[n_main:].astype(jnp.float32)) ** 3)
    return result


# ---------------------------------------------------------------------------
# Full Adv_Loss forward (glue in plain JAX: scalar adds only).
# ---------------------------------------------------------------------------
def adv_loss_forward(pos_score, neg_score, subsampling_weight, ent_emb, rel_emb):
    main = adv_loss_main(pos_score, neg_score, subsampling_weight)
    reg = REGULARIZATION * (norm3_cubed(ent_emb) + norm3_cubed(rel_emb))
    return main + reg


# Pure-JAX reference for verification.
def adv_loss_reference(pos_score, neg_score, subsampling_weight, ent_emb, rel_emb):
    neg = jnp.sum(
        jax.nn.softmax(neg_score * ADV_TEMP, axis=1) * jax.nn.log_sigmoid(-neg_score),
        axis=1,
    )
    pos = jax.nn.log_sigmoid(pos_score).reshape(neg.shape[0])
    w = subsampling_weight
    pos_loss = -jnp.sum(w * pos) / jnp.sum(w)
    neg_loss = -jnp.sum(w * neg) / jnp.sum(w)
    loss = (pos_loss + neg_loss) / 2.0
    reg = REGULARIZATION * (
        jnp.sum(jnp.abs(ent_emb.astype(jnp.float32)) ** 3)
        + jnp.sum(jnp.abs(rel_emb.astype(jnp.float32)) ** 3)
    )
    return loss + reg


# TODO(synk): PyTorch detaches the adversarial softmax (.detach()); this forward-only
# port matches values, but a future custom_vjp must not backprop through the softmax.

if __name__ == "__main__":
    # Intentionally ragged shapes to exercise masking / edge-block handling.
    B, N = 10, 100          # batch, negatives per positive
    NUM_ENT, NUM_REL, DIM = 70, 33, 40

    key = jax.random.PRNGKey(0)
    k1, k2, k3, k4, k5 = jax.random.split(key, 5)

    pos_score = jax.random.normal(k1, (B, 1), dtype=jnp.float32)
    neg_score = jax.random.normal(k2, (B, N), dtype=jnp.float32)
    subsampling_weight = jax.random.uniform(
        k3, (B,), dtype=jnp.float32, minval=0.1, maxval=1.0
    )
    # Deterministic synthetic "model" parameters (shapes from a KGE model).
    ent_emb = 0.1 * jax.random.normal(k4, (NUM_ENT, DIM), dtype=jnp.float32)
    rel_emb = 0.1 * jax.random.normal(k5, (NUM_REL, DIM), dtype=jnp.float32)

    loss = adv_loss_forward(pos_score, neg_score, subsampling_weight, ent_emb, rel_emb)
    loss = jax.block_until_ready(loss)

    ref = adv_loss_reference(pos_score, neg_score, subsampling_weight, ent_emb, rel_emb)
    if not jnp.allclose(loss, ref, rtol=1e-4, atol=1e-5):
        raise AssertionError(f"mismatch: pallas={loss} ref={ref}")

    print("KERNEL_OK")
</pallas_src>

<mosaic_0001>
module attributes {stable_mosaic.version = 11 : i64} {
  func.func @adv_loss_kernel(%arg0: i32, %arg1: i32, %arg2: memref<16x1xf32, #tpu.memory_space<vmem>>, %arg3: memref<16x100xf32, #tpu.memory_space<vmem>>, %arg4: memref<16x1xf32, #tpu.memory_space<vmem>>, %arg5: memref<1x1x1xf32, #tpu.memory_space<vmem>>, %arg6: memref<1x1x1xf32, #tpu.memory_space<vmem>>, %arg7: memref<1x1x1xf32, #tpu.memory_space<vmem>>, %arg8: memref<8x1xf32, #tpu.memory_space<vmem>>, %arg9: memref<8x1xf32, #tpu.memory_space<vmem>>, %arg10: memref<8x1xf32, #tpu.memory_space<vmem>>) attributes {dimension_semantics = [#tpu.dimension_semantics<parallel>, #tpu.dimension_semantics<arbitrary>], iteration_bounds = array<i64: 1, 1>, scalar_prefetch = 0 : i64, scratch_operands = 3 : i64, tpu.core_type = #tpu.core_type<tc>, window_params = [{pipeline_mode = #tpu.pipeline_mode<synchronous>, transform_indices = @transform_0, window_bounds = array<i64: 16, 1>}, {transform_indices = @transform_1, window_bounds = array<i64: 16, 100>}, {pipeline_mode = #tpu.pipeline_mode<synchronous>, transform_indices = @transform_2, window_bounds = array<i64: 16, 1>}, {transform_indices = @transform_3, window_bounds = array<i64: 1, 1, 1>}, {transform_indices = @transform_4, window_bounds = array<i64: 1, 1, 1>}, {transform_indices = @transform_5, window_bounds = array<i64: 1, 1, 1>}]} {
    %c0_i32 = arith.constant 0 : i32
    %0 = arith.cmpi eq, %arg1, %c0_i32 : i32
    %1 = arith.extui %0 : i1 to i32
    %c0_i32_0 = arith.constant 0 : i32
    %2 = arith.cmpi ne, %1, %c0_i32_0 : i32
    scf.if %2 {
      %cst_29 = arith.constant 0.000000e+00 : f32
      %69 = vector.broadcast %cst_29 : f32 to vector<8x1xf32>
      %c0_30 = arith.constant 0 : index
      %c0_31 = arith.constant 0 : index
      %70 = vector.load %arg8[%c0_30, %c0_31] : memref<8x1xf32, #tpu.memory_space<vmem>>, vector<8x1xf32>
      tpu.vector_store %arg8[%c0_30, %c0_31], %69 {strides = array<i32>} : memref<8x1xf32, #tpu.memory_space<vmem>>, vector<8x1xf32>,
      %cst_32 = arith.constant 0.000000e+00 : f32
      %71 = vector.broadcast %cst_32 : f32 to vector<8x1xf32>
      %c0_33 = arith.constant 0 : index
      %c0_34 = arith.constant 0 : index
      %72 = vector.load %arg9[%c0_33, %c0_34] : memref<8x1xf32, #tpu.memory_space<vmem>>, vector<8x1xf32>
      tpu.vector_store %arg9[%c0_33, %c0_34], %71 {strides = array<i32>} : memref<8x1xf32, #tpu.memory_space<vmem>>, vector<8x1xf32>,
      %cst_35 = arith.constant 0.000000e+00 : f32
      %73 = vector.broadcast %cst_35 : f32 to vector<8x1xf32>
      %c0_36 = arith.constant 0 : index
      %c0_37 = arith.constant 0 : index
      %74 = vector.load %arg10[%c0_36, %c0_37] : memref<8x1xf32, #tpu.memory_space<vmem>>, vector<8x1xf32>
      tpu.vector_store %arg10[%c0_36, %c0_37], %73 {strides = array<i32>} : memref<8x1xf32, #tpu.memory_space<vmem>>, vector<8x1xf32>,
    } else {
    }
    %c1_i32 = arith.constant 1 : i32
    %3 = arith.muli %arg0, %c1_i32 : i32
    %4 = arith.addi %3, %arg1 : i32
    %c16_i32 = arith.constant 16 : i32
    %5 = arith.muli %4, %c16_i32 : i32
    %6 = arith.index_cast %5 : i32 to index
    %c0 = arith.constant 0 : index
    %7 = vector.load %arg2[%6, %c0] : memref<16x1xf32, #tpu.memory_space<vmem>>, vector<16x1xf32>
    %8 = arith.index_cast %5 : i32 to index
    %c0_1 = arith.constant 0 : index
    %9 = vector.load %arg4[%8, %c0_1] : memref<16x1xf32, #tpu.memory_space<vmem>>, vector<16x1xf32>
    %c0_2 = arith.constant 0 : index
    %c0_3 = arith.constant 0 : index
    %10 = vector.load %arg3[%c0_2, %c0_3] : memref<16x100xf32, #tpu.memory_space<vmem>>, vector<16x100xf32>
    %cst = arith.constant dense<0xFF800000> : vector<16xf32>
    %11 = vector.multi_reduction <maximumf>, %10, %cst [1] : vector<16x100xf32> to vector<16xf32>
    %12 = vector.shape_cast %11 : vector<16xf32> to vector<16x1xf32>
    %cst_4 = arith.constant -3.000000e+01 : f32
    %13 = vector.broadcast %cst_4 : f32 to vector<16x1xf32>
    %14 = arith.maximumf %12, %13 : vector<16x1xf32>
    %15 = vector.broadcast %14 : vector<16x1xf32> to vector<16x100xf32>
    %16 = arith.subf %10, %15 : vector<16x100xf32>
    %17 = math.exp %16 : vector<16x100xf32>
    %cst_5 = arith.constant dense<0.000000e+00> : vector<16xf32>
    %18 = vector.multi_reduction <add>, %17, %cst_5 [1] : vector<16x100xf32> to vector<16xf32>
    %19 = vector.shape_cast %18 : vector<16xf32> to vector<16x1xf32>
    %cst_6 = arith.constant 0.000000e+00 : f32
    %20 = vector.broadcast %cst_6 : f32 to vector<16x1xf32>
    %21 = arith.subf %20, %14 : vector<16x1xf32>
    %22 = math.exp %21 : vector<16x1xf32>
    %23 = vector.broadcast %22 : vector<16x1xf32> to vector<16x100xf32>
    %24 = arith.addf %23, %17 : vector<16x100xf32>
    %25 = math.log %24 : vector<16x100xf32>
    %26 = vector.broadcast %14 : vector<16x1xf32> to vector<16x100xf32>
    %27 = arith.addf %26, %25 : vector<16x100xf32>
    %cst_7 = arith.constant 0.000000e+00 : f32
    %28 = vector.broadcast %cst_7 : f32 to vector<16x100xf32>
    %29 = arith.subf %28, %27 : vector<16x100xf32>
    %30 = arith.mulf %17, %29 : vector<16x100xf32>
    %cst_8 = arith.constant dense<0.000000e+00> : vector<16xf32>
    %31 = vector.multi_reduction <add>, %30, %cst_8 [1] : vector<16x100xf32> to vector<16xf32>
    %32 = vector.shape_cast %31 : vector<16xf32> to vector<16x1xf32>
    %33 = arith.divf %32, %19 : vector<16x1xf32>
    %34 = tpu.iota {dimensions = array<i32: 0>} : vector<16x1xi32>
    %35 = vector.broadcast %5 : i32 to vector<16x1xi32>
    %36 = arith.addi %34, %35 : vector<16x1xi32>
    %c10_i32 = arith.constant 10 : i32
    %37 = vector.broadcast %c10_i32 : i32 to vector<16x1xi32>
    %38 = arith.cmpi slt, %36, %37 : vector<16x1xi32>
    %cst_9 = arith.constant 0.000000e+00 : f32
    %39 = vector.broadcast %cst_9 : f32 to vector<16x1xf32>
    %40 = arith.select %38, %33, %39 : vector<16x1xi1>, vector<16x1xf32>
    %cst_10 = arith.constant 0.000000e+00 : f32
    %41 = vector.broadcast %cst_10 : f32 to vector<16x1xf32>
    %42 = arith.minimumf %7, %41 : vector<16x1xf32>
    %43 = math.absf %7 : vector<16x1xf32>
    %cst_11 = arith.constant 0.000000e+00 : f32
    %44 = vector.broadcast %cst_11 : f32 to vector<16x1xf32>
    %45 = arith.subf %44, %43 : vector<16x1xf32>
    %46 = math.exp %45 : vector<16x1xf32>
    %47 = math.log1p %46 : vector<16x1xf32>
    %48 = arith.subf %42, %47 : vector<16x1xf32>
    %c0_12 = arith.constant 0 : index
    %c0_13 = arith.constant 0 : index
    %49 = vector.load %arg8[%c0_12, %c0_13] : memref<8x1xf32, #tpu.memory_space<vmem>>, vector<8x1xf32>
    %50 = vector.shape_cast %9 : vector<16x1xf32> to vector<2x8x1xf32>
    %cst_14 = arith.constant dense<0.000000e+00> : vector<8x1xf32>
    %51 = vector.multi_reduction <add>, %50, %cst_14 [0] : vector<2x8x1xf32> to vector<8x1xf32>
    %52 = arith.addf %49, %51 : vector<8x1xf32>
    %c0_15 = arith.constant 0 : index
    %c0_16 = arith.constant 0 : index
    %53 = vector.load %arg8[%c0_15, %c0_16] : memref<8x1xf32, #tpu.memory_space<vmem>>, vector<8x1xf32>
    tpu.vector_store %arg8[%c0_15, %c0_16], %52 {strides = array<i32>} : memref<8x1xf32, #tpu.memory_space<vmem>>, vector<8x1xf32>,
    %c0_17 = arith.constant 0 : index
    %c0_18 = arith.constant 0 : index
    %54 = vector.load %arg9[%c0_17, %c0_18] : memref<8x1xf32, #tpu.memory_space<vmem>>, vector<8x1xf32>
    %55 = arith.mulf %9, %48 : vector<16x1xf32>
    %56 = vector.shape_cast %55 : vector<16x1xf32> to vector<2x8x1xf32>
    %cst_19 = arith.constant dense<0.000000e+00> : vector<8x1xf32>
    %57 = vector.multi_reduction <add>, %56, %cst_19 [0] : vector<2x8x1xf32> to vector<8x1xf32>
    %58 = arith.addf %54, %57 : vector<8x1xf32>
    %c0_20 = arith.constant 0 : index
    %c0_21 = arith.constant 0 : index
    %59 = vector.load %arg9[%c0_20, %c0_21] : memref<8x1xf32, #tpu.memory_space<vmem>>, vector<8x1xf32>
    tpu.vector_store %arg9[%c0_20, %c0_21], %58 {strides = array<i32>} : memref<8x1xf32, #tpu.memory_space<vmem>>, vector<8x1xf32>,
    %c0_22 = arith.constant 0 : index
    %c0_23 = arith.constant 0 : index
    %60 = vector.load %arg10[%c0_22, %c0_23] : memref<8x1xf32, #tpu.memory_space<vmem>>, vector<8x1xf32>
    %61 = arith.mulf %9, %40 : vector<16x1xf32>
    %62 = vector.shape_cast %61 : vector<16x1xf32> to vector<2x8x1xf32>
    %cst_24 = arith.constant dense<0.000000e+00> : vector<8x1xf32>
    %63 = vector.multi_reduction <add>, %62, %cst_24 [0] : vector<2x8x1xf32> to vector<8x1xf32>
    %64 = arith.addf %60, %63 : vector<8x1xf32>
    %c0_25 = arith.constant 0 : index
    %c0_26 = arith.constant 0 : index
    %65 = vector.load %arg10[%c0_25, %c0_26] : memref<8x1xf32, #tpu.memory_space<vmem>>, vector<8x1xf32>
    tpu.vector_store %arg10[%c0_25, %c0_26], %64 {strides = array<i32>} : memref<8x1xf32, #tpu.memory_space<vmem>>, vector<8x1xf32>,
    %c0_i32_27 = arith.constant 0 : i32
    %66 = arith.cmpi eq, %arg1, %c0_i32_27 : i32
    %67 = arith.extui %66 : i1 to i32
    %c0_i32_28 = arith.constant 0 : i32
    %68 = arith.cmpi ne, %67, %c0_i32_28 : i32
    scf.if %68 {
      %c0_29 = arith.constant 0 : index
      %c0_30 = arith.constant 0 : index
      %69 = vector.load %arg8[%c0_29, %c0_30] : memref<8x1xf32, #tpu.memory_space<vmem>>, vector<8x1xf32>
      %70 = vector.shape_cast %69 : vector<8x1xf32> to vector<1x8x1xf32>
      %cst_31 = arith.constant dense<0.000000e+00> : vector<1xf32>
      %71 = vector.multi_reduction <add>, %70, %cst_31 [1, 2] : vector<1x8x1xf32> to vector<1xf32>
      %72 = vector.shape_cast %71 : vector<1xf32> to vector<1x1x1xf32>
      %73 = vector.extract %72[0, 0, 0] : f32 from vector<1x1x1xf32>
      %74 = vector.broadcast %73 : f32 to vector<1x1x1xf32>
      %c0_32 = arith.constant 0 : index
      %c0_33 = arith.constant 0 : index
      %c0_34 = arith.constant 0 : index
      %75 = vector.load %arg5[%c0_32, %c0_33, %c0_34] : memref<1x1x1xf32, #tpu.memory_space<vmem>>, vector<1x1x1xf32>
      tpu.vector_store %arg5[%c0_32, %c0_33, %c0_34], %74 {strides = array<i32>} : memref<1x1x1xf32, #tpu.memory_space<vmem>>, vector<1x1x1xf32>,
      %c0_35 = arith.constant 0 : index
      %c0_36 = arith.constant 0 : index
      %76 = vector.load %arg9[%c0_35, %c0_36] : memref<8x1xf32, #tpu.memory_space<vmem>>, vector<8x1xf32>
      %77 = vector.shape_cast %76 : vector<8x1xf32> to vector<1x8x1xf32>
      %cst_37 = arith.constant dense<0.000000e+00> : vector<1xf32>
      %78 = vector.multi_reduction <add>, %77, %cst_37 [1, 2] : vector<1x8x1xf32> to vector<1xf32>
      %79 = vector.shape_cast %78 : vector<1xf32> to vector<1x1x1xf32>
      %80 = vector.extract %79[0, 0, 0] : f32 from vector<1x1x1xf32>
      %81 = vector.broadcast %80 : f32 to vector<1x1x1xf32>
      %c0_38 = arith.constant 0 : index
      %c0_39 = arith.constant 0 : index
      %c0_40 = arith.constant 0 : index
      %82 = vector.load %arg6[%c0_38, %c0_39, %c0_40] : memref<1x1x1xf32, #tpu.memory_space<vmem>>, vector<1x1x1xf32>
      tpu.vector_store %arg6[%c0_38, %c0_39, %c0_40], %81 {strides = array<i32>} : memref<1x1x1xf32, #tpu.memory_space<vmem>>, vector<1x1x1xf32>,
      %c0_41 = arith.constant 0 : index
      %c0_42 = arith.constant 0 : index
      %83 = vector.load %arg10[%c0_41, %c0_42] : memref<8x1xf32, #tpu.memory_space<vmem>>, vector<8x1xf32>
      %84 = vector.shape_cast %83 : vector<8x1xf32> to vector<1x8x1xf32>
      %cst_43 = arith.constant dense<0.000000e+00> : vector<1xf32>
      %85 = vector.multi_reduction <add>, %84, %cst_43 [1, 2] : vector<1x8x1xf32> to vector<1xf32>
      %86 = vector.shape_cast %85 : vector<1xf32> to vector<1x1x1xf32>
      %87 = vector.extract %86[0, 0, 0] : f32 from vector<1x1x1xf32>
      %88 = vector.broadcast %87 : f32 to vector<1x1x1xf32>
      %c0_44 = arith.constant 0 : index
      %c0_45 = arith.constant 0 : index
      %c0_46 = arith.constant 0 : index
      %89 = vector.load %arg7[%c0_44, %c0_45, %c0_46] : memref<1x1x1xf32, #tpu.memory_space<vmem>>, vector<1x1x1xf32>
      tpu.vector_store %arg7[%c0_44, %c0_45, %c0_46], %88 {strides = array<i32>} : memref<1x1x1xf32, #tpu.memory_space<vmem>>, vector<1x1x1xf32>,
    } else {
    }
    return
  }
  func.func @transform_0(%arg0: i32, %arg1: i32) -> (i32, i32) {
    %c0_i32 = arith.constant 0 : i32
    %c0_i32_0 = arith.constant 0 : i32
    %c0_i32_1 = arith.constant 0 : i32
    return %c0_i32, %c0_i32_0 : i32, i32
  }
  func.func @transform_1(%arg0: i32, %arg1: i32) -> (i32, i32) {
    %c1_i32 = arith.constant 1 : i32
    %0 = arith.muli %arg0, %c1_i32 : i32
    %1 = arith.addi %0, %arg1 : i32
    %c0_i32 = arith.constant 0 : i32
    %c0_i32_0 = arith.constant 0 : i32
    return %1, %c0_i32 : i32, i32
  }
  func.func @transform_2(%arg0: i32, %arg1: i32) -> (i32, i32) {
    %c0_i32 = arith.constant 0 : i32
    %c0_i32_0 = arith.constant 0 : i32
    %c0_i32_1 = arith.constant 0 : i32
    return %c0_i32, %c0_i32_0 : i32, i32
  }
  func.func @transform_3(%arg0: i32, %arg1: i32) -> (i32, i32, i32) {
    %c0_i32 = arith.constant 0 : i32
    %c0_i32_0 = arith.constant 0 : i32
    %c0_i32_1 = arith.constant 0 : i32
    return %arg0, %c0_i32, %c0_i32_0 : i32, i32, i32
  }
  func.func @transform_4(%arg0: i32, %arg1: i32) -> (i32, i32, i32) {
    %c0_i32 = arith.constant 0 : i32
    %c0_i32_0 = arith.constant 0 : i32
    %c0_i32_1 = arith.constant 0 : i32
    return %arg0, %c0_i32, %c0_i32_0 : i32, i32, i32
  }
  func.func @transform_5(%arg0: i32, %arg1: i32) -> (i32, i32, i32) {
    %c0_i32 = arith.constant 0 : i32
    %c0_i32_0 = arith.constant 0 : i32
    %c0_i32_1 = arith.constant 0 : i32
    return %arg0, %c0_i32, %c0_i32_0 : i32, i32, i32
  }
}

</mosaic_0001>

<bundles_post_ra>
// kernel: tpu_custom_call.1
= control target key start
LH: loop header
LB: loop body
LE: loop exit
PB: predicated region body
PF: predicated region fallthrough
CT: control target
= control target key end

     0   :  { %11 = vsyncpa [#allocation6], 0  ;;  %vm59_vm0 = vcmask 818176   ;;  %s498_s0 = inlined_call_operand.vmem [shape: f32[16,1], index: 0, kind: input, shape index: {}]   ;;  %s499_s1 = inlined_call_operand.vmem [shape: f32[10,100], index: 1, kind: input, shape index: {}]   ;;  %s500_s2 = inlined_call_operand.vmem [shape: f32[16,1], index: 2, kind: input, shape index: {}]   ;;  %s501_s3 = inlined_call_operand.hbm [shape: f32[1,1,1], index: 3, kind: output, shape index: {0}]   ;;  %s502_s4 = inlined_call_operand.hbm [shape: f32[1,1,1], index: 4, kind: output, shape index: {1}]   ;;  %s503_s5 = inlined_call_operand.hbm [shape: f32[1,1,1], index: 5, kind: output, shape index: {2}]  }
   0x1   :  { %v58_v0 = vld [vmem:[%s499_s1 + $0x8] sm:$0xff] }
   0x2   :  { %12 = vsyncpa [#allocation8], 0  ;;  %v63_v1 = vsel %vm59_vm0, %v58_v0, -inf  ;;  %v57_v2 = vld [vmem:[%s499_s1] sm:$0xff]  ;;  %v53_v36 = vld [vmem:[%s498_s0 + $0x8] sm:$0xff]  ;;  %vm45_vm1 = vcmask 7168  }
   0x3   :  { %64 = vmax.xlane.f32.xlu0 %v63_v1  ;;  %v60_v3 = vsel %vm59_vm0, %v57_v2, -inf  ;;  %v52_v37 = vld [vmem:[%s498_s0] sm:$0xff]  ;;  %v147_v38 = vand.u32 2147483647, %v53_v36  ;;  %v145_v59 = vmin.f32 %v53_v36, 0.0  ;;  %v458_v60 = vld [vmem:[%s500_s2 + $0x8] sm:$0xff] }
   0x4   :  { %v146_v39 = vand.u32 2147483647, %v52_v37  ;;  %v144_v62 = vmin.f32 %v52_v37, 0.0  ;;  %v403_v1 = vmov 0.0   ;;  %s247_s6 = sshll.u32 %s501_s3, 4  ;;  %s405_s7 = smov [#allocation5]   ;;  %s248_s6 = int_to_ptr.hbm [resolvable:$true] %s247_s6 }
   0x5   :  { %v149_v40 = vsub.f32 0.0, %v147_v38  ;;  %46 = vst.msk [vmem:[#allocation2] sm:$0xff] %vm45_vm1, %v403_v1  ;;  %s245_s8 = sshll.u32 %s405_s7, 4  ;;  %s258_s11 = sshll.u32 %s502_s4, 4  ;;  %vm212_vm13 = vcmask 0   ;;  %s246_s8 = int_to_ptr.vmem [resolvable:$true] %s245_s8  ;;  %s259_s11 = int_to_ptr.hbm [resolvable:$true] %s258_s11 }
   0x6   :  { %v148_v41 = vsub.f32 0.0, %v146_v39  ;;  %47 = vst.msk [vmem:[#allocation3] sm:$0xff] %vm45_vm1, %v403_v1  ;;  %s406_s3 = smov [#allocation9]   ;;  %s269_s4 = sshll.u32 %s503_s5, 4  ;;  %s270_s4 = int_to_ptr.hbm [resolvable:$true] %s269_s4 }
   0x7   :  { %v152_v42 = vmul.f32 1.442695, %v149_v40  ;;  %48 = vst.msk [vmem:[#allocation4] sm:$0xff] %vm45_vm1, %v403_v1  ;;  %s267_s14 = sshll.u32 %s406_s3, 4  ;;  %s268_s14 = int_to_ptr.vmem [resolvable:$true] %s267_s14 }
   0x8   :  { %v150_v43 = vmul.f32 1.442695, %v148_v41 }
   0xb   :  { %61 = vmax.xlane.f32.xlu0 %v60_v3 }
  0x76   :  { %v65_v4 = vpop.xlane.xlu0 %64 }
  0x77   :  { %v67_v5 = vmax.f32 %v65_v4, -30.0  ;;  %v177_v4 = vsel %vm45_vm1, %v458_v60, 0.0 }
  0x79   :  { %v69_v6 = vsub.f32 %v58_v0, %v67_v5  ;;  %v81_v7 = vsub.f32 0.0, %v67_v5 }
  0x7b   :  { %v72_v8 = vmul.f32 1.442695, %v69_v6  ;;  %v84_v9 = vmul.f32 1.442695, %v81_v7 }
  0x7d   :  { %303 = vpow2.f32 %v72_v8 }
  0x7e   :  { %305 = vpow2.f32 %v84_v9  ;;  %v62_v10 = vpop.xlane.xlu0 %61 }
  0x7f   :  { %v66_v11 = vmax.f32 %v62_v10, -30.0 }
  0x81   :  { %v68_v12 = vsub.f32 %v57_v2, %v66_v11  ;;  %v80_v13 = vsub.f32 0.0, %v66_v11  ;;  %v465_v2 = vld [vmem:[%s500_s2] sm:$0xff]  ;;  %s404_s2 = smov [#allocation7]  }
  0x82   :  { %v176_v8 = vsel %vm45_vm1, %v465_v2, 0.0  ;;  %s256_s28 = sshll.u32 %s404_s2, 4  ;;  %s257_s28 = int_to_ptr.vmem [resolvable:$true] %s256_s28 }
  0x83   :  { %v304_v14 = vpop.eup %303  ;;  %v70_v15 = vmul.f32 1.442695, %v68_v12  ;;  %v82_v16 = vmul.f32 1.442695, %v80_v13  ;;  %v178_v10 = vadd.f32 %v177_v4, %v176_v8  ;;  %v174_v12 = vld [vmem:[#allocation2] sm:$0xff] }
  0x84   :  { %v306_v17 = vpop.eup %305  ;;  %v77_v18 = vsel %vm59_vm0, %v304_v14, 0.0 }
  0x85   :  { %307 = vpow2.f32 %v70_v15  ;;  %78 = vadd.xlane.f32.xlu1 %v77_v18  ;;  %v87_v19 = vadd.f32 %v306_v17, %v304_v14  ;;  %v181_v15 = vld [vmem:[#allocation3] sm:$0xff] }
  0x86   :  { %309 = vpow2.f32 %v82_v16 }
  0x87   :  { %311 = vlog2.f32 %v87_v19 }
  0x8b   :  { %v308_v20 = vpop.eup %307 }
  0x8c   :  { %v310_v21 = vpop.eup %309  ;;  %v74_v22 = vsel %vm59_vm0, %v308_v20, 0.0 }
  0x8d   :  { %v312_v23 = vpop.eup %311  ;;  %75 = vadd.xlane.f32.xlu1 %v74_v22  ;;  %v86_v24 = vadd.f32 %v310_v21, %v308_v20 }
  0x8e   :  { %v91_v25 = vmul.f32 0.6931472, %v312_v23 }
  0x8f   :  { %313 = vlog2.f32 %v86_v24 }
  0x90   :  { %v93_v26 = vadd.f32 %v91_v25, %v67_v5  ;;  %315 = vpow2.f32 %v152_v42  ;;  %v134_v25 = vlaneseq }
  0x91   :  { %317 = vpow2.f32 %v150_v43 }
  0x92   :  { %v95_v27 = vsub.f32 0.0, %v93_v26 }
  0x94   :  { %v97_v28 = vmul.f32 %v304_v14, %v95_v27  ;;  %v179_v14 = vadd.f32 %v178_v10, %v174_v12 }
  0x95   :  { %v314_v29 = vpop.eup %313 }
  0x96   :  { %v101_v30 = vsel %vm59_vm0, %v97_v28, 0.0  ;;  %v89_v31 = vmul.f32 0.6931472, %v314_v29  ;;  %v316_v44 = vpop.eup %315  ;;  %180 = vst.msk [vmem:[#allocation2] sm:$0xff] %vm45_vm1, %v179_v14 }
  0x97   :  { %102 = vadd.xlane.f32.xlu2 %v101_v30  ;;  %v318_v45 = vpop.eup %317  ;;  %v163_v46 = vadd.f32 1.0, %v316_v44  ;;  %v166_v48 = vmul.f32 -0.5, %v316_v44  ;;  %v169_v53 = vand.u32 2147483647, %v316_v44  ;;  %v135_v30 = vshrl.u32 %v134_v25, 7 }
  0x98   :  { %v92_v32 = vadd.f32 %v89_v31, %v66_v11  ;;  %v154_v47 = vadd.f32 1.0, %v318_v45  ;;  %v157_v49 = vmul.f32 -0.5, %v318_v45  ;;  %v160_v54 = vand.u32 2147483647, %v318_v45 }
  0x99   :  { %319 = vlog2.f32 %v163_v46  ;;  %v167_v50 = vadd.f32 1.0, %v166_v48  ;;  %vm170_vm2 = vcmp.lt.f32.partialorder %v169_v53, 0.0004427343  ;;  %v136_v36 = vadd.s32 8, %v135_v30 }
  0x9a   :  { %v94_v33 = vsub.f32 0.0, %v92_v32  ;;  %321 = vlog2.f32 %v154_v47  ;;  %v158_v51 = vadd.f32 1.0, %v157_v49  ;;  %vm161_vm3 = vcmp.lt.f32.partialorder %v160_v54, 0.0004427343  ;;  %v189_v54 = vld [vmem:[#allocation4] sm:$0xff] }
  0x9b   :  { %v168_v57 = vmul.f32 %v316_v44, %v167_v50  ;;  %vm141_vm9 = vcmp.lt.s32.totalorder %v136_v36, 10 }
  0x9c   :  { %v96_v34 = vmul.f32 %v308_v20, %v94_v33  ;;  %v159_v58 = vmul.f32 %v318_v45, %v158_v51 }
  0x9d   :  { %v200_v18 = vld [vmem:[#allocation2] sm:$0xff] }
  0x9e   :  { %v98_v35 = vsel %vm59_vm0, %v96_v34, 0.0  ;;  %v201_v20 = vsel %vm45_vm1, %v200_v18, 0.0 }
  0x9f   :  { %99 = vadd.xlane.f32.xlu2 %v98_v35  ;;  %v320_v52 = vpop.eup %319  ;;  %202 = vadd.xlane.f32.xlu0 %v201_v20 }
  0xa0   :  { %v322_v55 = vpop.eup %321  ;;  %v165_v56 = vmul.f32 0.6931472, %v320_v52 }
  0xa1   :  { %v156_v63 = vmul.f32 0.6931472, %v322_v55 }
  0xa2   :  { %v171_v61 = vsel %vm170_vm2, %v168_v57, %v165_v56 }
  0xa3   :  { %v173_v0 = vsub.f32 %v145_v59, %v171_v61  ;;  %v162_v3 = vsel %vm161_vm3, %v159_v58, %v156_v63 }
  0xa4   :  { %v172_v6 = vsub.f32 %v144_v62, %v162_v3 }
  0xa5   :  { %v183_v5 = vmul.f32 %v173_v0, %v458_v60 }
  0xa6   :  { %v182_v9 = vmul.f32 %v172_v6, %v465_v2 }
  0xa7   :  { %v185_v7 = vsel %vm45_vm1, %v183_v5, 0.0 }
  0xa8   :  { %v184_v11 = vsel %vm45_vm1, %v182_v9, 0.0 }
  0xa9   :  { %v186_v13 = vadd.f32 %v185_v7, %v184_v11 }
  0xab   :  { %v187_v16 = vadd.f32 %v186_v13, %v181_v15 }
  0xad   :  { %188 = vst.msk [vmem:[#allocation3] sm:$0xff] %vm45_vm1, %v187_v16 }
  0xb4   :  { %v214_v19 = vld [vmem:[#allocation3] sm:$0xff] }
  0xb5   :  { %v215_v22 = vsel %vm45_vm1, %v214_v19, 0.0 }
  0xb6   :  { %216 = vadd.xlane.f32.xlu1 %v215_v22 }
  0xf8   :  { %v79_v17 = vpop.xlane.xlu1 %78 }
  0xf9   :  { %323 = vrcp.f32 %v79_v17  ;;  %v130_v27 = vand.u32 2147483648, %v79_v17  ;;  %v128_v29 = vand.u32 2147483647, %v79_v17  ;;  %vm124_vm5 = vweird.f32 %v79_v17 }
  0xfb   :  { %v131_v33 = vor.u32 1.1754944e-38, %v130_v27  ;;  %vm129_vm7 = vcmp.eq.f32.partialorder %v128_v29, 8.507059e+37 }
  0xff   :  { %v324_v21 = vpop.eup %323 }
 0x100   :  { %v120_v23 = vmul.f32 %v324_v21, %v79_v17  ;;  %v76_v24 = vpop.xlane.xlu1 %75  ;;  %vm125_vm4 = vweird.f32 %v324_v21 }
 0x101   :  { %325 = vrcp.f32 %v76_v24  ;;  %vm126_vm6 = vmor %vm124_vm5, %vm125_vm4  ;;  %v115_v40 = vand.u32 2147483648, %v76_v24  ;;  %v113_v43 = vand.u32 2147483647, %v76_v24  ;;  %vm109_vm10 = vweird.f32 %v76_v24 }
 0x102   :  { %v121_v26 = vsub.f32 1.0, %v120_v23 }
 0x103   :  { %v116_v45 = vor.u32 1.1754944e-38, %v115_v40  ;;  %vm114_vm12 = vcmp.eq.f32.partialorder %v113_v43, 8.507059e+37 }
 0x104   :  { %v122_v28 = vmul.f32 %v324_v21, %v121_v26 }
 0x106   :  { %v123_v31 = vadd.f32 %v324_v21, %v122_v28 }
 0x107   :  { %v326_v32 = vpop.eup %325 }
 0x108   :  { %v105_v34 = vmul.f32 %v326_v32, %v76_v24  ;;  %v127_v35 = vsel %vm126_vm6, %v324_v21, %v123_v31  ;;  %vm110_vm8 = vweird.f32 %v326_v32 }
 0x109   :  { %v132_v37 = vsel %vm129_vm7, %v131_v33, %v127_v35  ;;  %vm111_vm11 = vmor %vm109_vm10, %vm110_vm8 }
 0x10a   :  { %v106_v38 = vsub.f32 1.0, %v105_v34  ;;  %v103_v39 = vpop.xlane.xlu2 %102 }
 0x10b   :  { %v133_v41 = vmul.f32 %v132_v37, %v103_v39 }
 0x10c   :  { %v107_v42 = vmul.f32 %v326_v32, %v106_v38 }
 0x10d   :  { %v143_v46 = vsel %vm141_vm9, %v133_v41, 0.0 }
 0x10e   :  { %v108_v44 = vadd.f32 %v326_v32, %v107_v42  ;;  %v191_v50 = vmul.f32 %v143_v46, %v458_v60 }
 0x110   :  { %v112_v47 = vsel %vm111_vm11, %v326_v32, %v108_v44  ;;  %v193_v53 = vsel %vm45_vm1, %v191_v50, 0.0 }
 0x111   :  { %v117_v48 = vsel %vm114_vm12, %v116_v45, %v112_v47 }
 0x112   :  { %v100_v49 = vpop.xlane.xlu2 %99  ;;  %v203_v61 = vpop.xlane.xlu0 %202 }
 0x113   :  { %v118_v51 = vmul.f32 %v117_v48, %v100_v49  ;;  %v204_v63 = vrot.slane %v203_v61, 4 }
 0x115   :  { %v190_v52 = vmul.f32 %v118_v51, %v465_v2  ;;  %v205_v0 = vadd.f32 %v204_v63, %v203_v61 }
 0x117   :  { %v192_v55 = vsel %vm45_vm1, %v190_v52, 0.0  ;;  %v206_v2 = vrot.slane %v205_v0, 2 }
 0x118   :  { %v194_v56 = vadd.f32 %v193_v53, %v192_v55 }
 0x119   :  { %v207_v4 = vadd.f32 %v206_v2, %v205_v0 }
 0x11a   :  { %v195_v57 = vadd.f32 %v194_v56, %v189_v54 }
 0x11b   :  { %v208_v6 = vrot.slane %v207_v4, 1 }
 0x11c   :  { %196 = vst.msk [vmem:[#allocation4] sm:$0xff] %vm45_vm1, %v195_v57 }
 0x11d   :  { %v209_v8 = vadd.f32 %v208_v6, %v207_v4 }
 0x11f   :  { %293 = vpush %v209_v8 }
 0x123   :  { %v227_v58 = vld [vmem:[#allocation4] sm:$0xff] }
 0x124   :  { %v228_v59 = vsel %vm45_vm1, %v227_v58, 0.0 }
 0x125   :  { %229 = vadd.xlane.f32.xlu2 %v228_v59 }
 0x129   :  { %v217_v62 = vpop.xlane.xlu1 %216 }
 0x12a   :  { %v218_v60 = vrot.slane %v217_v62, 4 }
 0x12c   :  { %v219_v1 = vadd.f32 %v218_v60, %v217_v62 }
 0x12e   :  { %v220_v3 = vrot.slane %v219_v1, 2 }
 0x130   :  { %v221_v5 = vadd.f32 %v220_v3, %v219_v1 }
 0x132   :  { %v222_v7 = vrot.slane %v221_v5, 1 }
 0x134   :  { %v223_v9 = vadd.f32 %v222_v7, %v221_v5 }
 0x136   :  { %295 = vpush %v223_v9 }
 0x150   :  { %s294_s12 = spop %293 }
 0x151   :  { %v211_v17 = vstv %s294_s12 }
 0x152   :  { %213 = vst.msk [vmem:[#allocation5] sm:$0x1] %vm212_vm13, %v211_v17 }
 0x153   :  { %250 = dma.vmem_to_hbm [thread:$0]  %s246_s8, 16, %s248_s6, [#allocation6]  }
 0x167   :  { %s296_s13 = spop %295 }
 0x168   :  { %v225_v18 = vstv %s296_s13 }
 0x169   :  { %226 = vst.msk [vmem:[#allocation7] sm:$0x1] %vm212_vm13, %v225_v18 }
 0x16a   :  { %261 = dma.vmem_to_hbm [thread:$0]  %s257_s28, 16, %s259_s11, [#allocation8]  }
 0x198   :  { %v230_v10 = vpop.xlane.xlu2 %229 }
 0x199   :  { %v231_v11 = vrot.slane %v230_v10, 4 }
 0x19b   :  { %v232_v12 = vadd.f32 %v231_v11, %v230_v10 }
 0x19d   :  { %v233_v13 = vrot.slane %v232_v12, 2 }
 0x19f   :  { %v234_v14 = vadd.f32 %v233_v13, %v232_v12 }
 0x1a1   :  { %v235_v15 = vrot.slane %v234_v14, 1 }
 0x1a3   :  { %v236_v16 = vadd.f32 %v235_v15, %v234_v14 }
 0x1a5   :  { %297 = vpush %v236_v16 }
 0x1d6   :  { %s298_s17 = spop %297 }
 0x1d7   :  { %v238_v19 = vstv %s298_s17 }
 0x1d8   :  { %239 = vst.msk [vmem:[#allocation9] sm:$0x1] %vm212_vm13, %v238_v19 }
 0x1d9   :  { %272 = dma.vmem_to_hbm [thread:$0]  %s268_s14, 16, %s270_s4, [#allocation8]  }
 0x1da   :  { %399 = dma.done.wait [#allocation6], 16  }
 0x1db   :  { %400 = vsyncadd [#allocation6], 4294967280 }
 0x1dc   :  { %401 = dma.done.wait [#allocation8], 32  }
 0x1dd   :  { %402 = vsyncadd [#allocation8], 4294967264 }
 0x1de   :  { %285 = vsyncpa [#allocation6], 1 }
 0x1df   :  { %286 = vsyncpa [#allocation8], 1 }

</bundles_post_ra>
